<compile_context>
chip_gen: v5e
topology: v5e:2x2
jax: 0.10.0
libtpu: 0.0.40
codegen_flags: <defaults>
</compile_context>

<pallas_src>
import functools

import jax
import jax.numpy as jnp
from jax.experimental import pallas as pl
from jax.experimental.pallas import tpu as pltpu

LANES = 128                      # vreg lane width
N_SPLIT = 2                      # leading "parallel" axis: 2 TCs on v7x, serial elsewhere
TARGET_BLOCK_BYTES = 2 * 1024 * 1024   # ~2 MiB per input per grid step (all gens' VMEM budgets)


def _round_up(x: int, m: int) -> int:
    return (x + m - 1) // m * m


def _rmse_partial_kernel(p_ref, t_ref, o_ref, *,
                         rows, tile_r, blocks_per_core, has_ragged):
    """Accumulate sum((p-t)^2) of this core's row blocks into a (8,128) partial."""
    c = pl.program_id(0)   # core / split index ("parallel")
    k = pl.program_id(1)   # block index within this core's range ("arbitrary")

    @pl.when(k == 0)
    def _():
        o_ref[...] = jnp.zeros_like(o_ref)

    # Native-dtype tiles streamed from HBM; upcast on the VPU (cheap filler,
    # the kernel is memory-bound).
    d = p_ref[...].astype(jnp.float32) - t_ref[...].astype(jnp.float32)
    sq = d * d

    def fold(x):
        # (tile_r,128) -> (tile_r//8, 8, 128): keeps each native (8,128) tile
        # intact, so the sum over the leading axis is pure vreg-vreg VPU adds.
        return x.reshape(tile_r // 8, 8, LANES).sum(axis=0)

    if not has_ragged:
        # Every block (on every core) is fully in range: no mask anywhere.
        o_ref[...] += fold(sq)
    else:
        row_start = (c * blocks_per_core + k) * tile_r   # intended global row start
        in_range = row_start + tile_r <= rows

        @pl.when(in_range)
        def _():                                          # full interior block: no mask cost
            o_ref[...] += fold(sq)

        @pl.when(jnp.logical_not(in_range))
        def _():                                          # ragged last block / clamped duplicate
            row_ids = row_start + jax.lax.broadcasted_iota(
                jnp.int32, (tile_r, LANES), 0)
            o_ref[...] += fold(jnp.where(row_ids < rows, sq, 0.0))


def rmse_loss(pred, target, eps: float = 1e-6):
    assert pred.shape == target.shape
    assert pred.shape[-1] == 2, "last dim must be real/imag"

    total = pred.size
    n_half = total // 2   # element count of each MSE term

    # Flatten (free for contiguous arrays) and view as a lane-dense 2-D slab.
    p_flat = pred.reshape(-1)
    t_flat = target.reshape(-1)

    rem = total % LANES
    if rem:
        # TODO(synk): rare unaligned path (numel % 128 != 0) still pads on the
        # host, doubling HBM traffic; a copy-free version needs manual-DMA /
        # 1-D blocks.  Identical zero-pads cancel in the squared difference,
        # so it is numerically exact.  Shapes with trailing dim 2 and
        # prod(other dims) % 64 == 0 take the copy-free path.
        pad = LANES - rem
        p_flat = jnp.pad(p_flat, (0, pad))
        t_flat = jnp.pad(t_flat, (0, pad))

    rows = p_flat.shape[0] // LANES
    p2 = p_flat.reshape(rows, LANES)
    t2 = t_flat.reshape(rows, LANES)

    # Per-dtype tile: fixed BYTES per input block (~2 MiB), multiple of 8 rows.
    itemsize = max(pred.dtype.itemsize, target.dtype.itemsize)
    target_rows = max(8, TARGET_BLOCK_BYTES // (LANES * itemsize))
    tile_r = min(target_rows, _round_up(rows, 8))

    total_blocks = pl.cdiv(rows, tile_r)          # static python ints
    bpc = pl.cdiv(total_blocks, N_SPLIT)          # blocks per core
    # Ragged handling needed if the last block is partial OR the split leaves a
    # core with out-of-range (clamped, fully-masked) duplicate blocks.
    has_ragged = (rows % tile_r != 0) or (total_blocks % N_SPLIT != 0)

    def in_map(c, k):
        # Contiguous split of blocks across the parallel axis; clamp so an
        # overshooting block index re-reads the last valid block (its rows are
        # fully masked in-kernel, contributing zero).
        blk = jnp.minimum(c * bpc + k, total_blocks - 1)
        return (blk, 0)

    kernel = functools.partial(
        _rmse_partial_kernel,
        rows=rows, tile_r=tile_r, blocks_per_core=bpc, has_ragged=has_ragged)

    partials = pl.pallas_call(
        kernel,
        out_shape=jax.ShapeDtypeStruct((N_SPLIT, 8, LANES), jnp.float32),
        grid_spec=pltpu.PrefetchScalarGridSpec(
            num_scalar_prefetch=0,
            grid=(N_SPLIT, bpc),
            in_specs=[
                pl.BlockSpec((tile_r, LANES), in_map),
                pl.BlockSpec((tile_r, LANES), in_map),
            ],
            # One lane-dense (8,128) partial-sum block per core, resident
            # across the reduction axis (index independent of k).
            out_specs=pl.BlockSpec((pl.Squeezed(), 8, LANES),
                                   lambda c, k: (c, 0, 0)),
        ),
        compiler_params=pltpu.CompilerParams(
            dimension_semantics=("parallel", "arbitrary"),
            vmem_limit_bytes=32 * 1024 * 1024,
        ),
    )(p2, t2)

    # Tiny epilogue on 2*8*128 floats: combine per-core partials, normalize,
    # add eps once (matches the PyTorch module), sqrt.
    return jnp.sqrt(partials.sum() / jnp.float32(n_half) + jnp.float32(eps))


def _ref_loss(pred, target, eps=1e-6):
    p = pred.astype(jnp.float32)
    t = target.astype(jnp.float32)
    return jnp.sqrt(
        jnp.mean((p[..., 0] - t[..., 0]) ** 2)
        + jnp.mean((p[..., 1] - t[..., 1]) ** 2)
        + eps)


if __name__ == "__main__":
    key = jax.random.PRNGKey(0)
    k1, k2, k3, k4, k5, k6 = jax.random.split(key, 6)

    # 1) Small f32 (batch, ..., 2): single partial block on core 0, fully
    #    masked duplicate block on core 1.
    shape1 = (2, 4, 16, 2)
    p1 = jax.random.normal(k1, shape1, dtype=jnp.float32)
    t1 = jax.random.normal(k2, shape1, dtype=jnp.float32)
    l1 = rmse_loss(p1, t1)
    jax.block_until_ready(l1)
    r1 = _ref_loss(p1, t1)
    assert jnp.allclose(l1, r1, rtol=1e-5, atol=1e-6), (l1, r1)

    # 2) bf16 inputs, ragged row count (rows = 1125), single block per core.
    shape2 = (2, 600, 60, 2)
    p2 = jax.random.normal(k3, shape2, dtype=jnp.bfloat16)
    t2 = jax.random.normal(k4, shape2, dtype=jnp.bfloat16)
    l2 = rmse_loss(p2, t2)
    jax.block_until_ready(l2)
    r2 = _ref_loss(p2, t2)
    assert jnp.allclose(l2, r2, rtol=1e-4, atol=1e-5), (l2, r2)

    # 3) f32 multi-block: rows = 9216, tile_r = 4096 -> 3 blocks split 2 cores
    #    (full blocks, one ragged block, one clamped fully-masked duplicate).
    shape3 = (8, 2048, 36, 2)
    p3 = jax.random.normal(k5, shape3, dtype=jnp.float32)
    t3 = jax.random.normal(k6, shape3, dtype=jnp.float32)
    l3 = rmse_loss(p3, t3)
    jax.block_until_ready(l3)
    r3 = _ref_loss(p3, t3)
    assert jnp.allclose(l3, r3, rtol=1e-4, atol=1e-6), (l3, r3)

    print("KERNEL_OK")
</pallas_src>

<mosaic_0001>
module attributes {stable_mosaic.version = 11 : i64} {
  func.func @_rmse_partial_kernel(%arg0: i32, %arg1: i32, %arg2: memref<8x128xf32, #tpu.memory_space<vmem>>, %arg3: memref<8x128xf32, #tpu.memory_space<vmem>>, %arg4: memref<1x8x128xf32, #tpu.memory_space<vmem>>) attributes {dimension_semantics = [#tpu.dimension_semantics<parallel>, #tpu.dimension_semantics<arbitrary>], iteration_bounds = array<i64: 2, 1>, scalar_prefetch = 0 : i64, scratch_operands = 0 : i64, tpu.core_type = #tpu.core_type<tc>, window_params = [{transform_indices = @transform_0, window_bounds = array<i64: 8, 128>}, {transform_indices = @transform_1, window_bounds = array<i64: 8, 128>}, {transform_indices = @transform_2, window_bounds = array<i64: 1, 8, 128>}]} {
    %c0_i32 = arith.constant 0 : i32
    %0 = arith.cmpi eq, %arg1, %c0_i32 : i32
    %1 = arith.extui %0 : i1 to i32
    %c0_i32_0 = arith.constant 0 : i32
    %2 = arith.cmpi ne, %1, %c0_i32_0 : i32
    scf.if %2 {
      %cst = arith.constant 0.000000e+00 : f32
      %17 = vector.broadcast %cst : f32 to vector<8x128xf32>
      %c0_7 = arith.constant 0 : index
      %c0_8 = arith.constant 0 : index
      %c0_9 = arith.constant 0 : index
      %18 = vector.load %arg4[%c0_7, %c0_8, %c0_9] : memref<1x8x128xf32, #tpu.memory_space<vmem>>, vector<1x8x128xf32>
      %19 = vector.shape_cast %18 : vector<1x8x128xf32> to vector<8x128xf32>
      %20 = vector.shape_cast %17 : vector<8x128xf32> to vector<1x8x128xf32>
      tpu.vector_store %arg4[%c0_7, %c0_8, %c0_9], %20 {strides = array<i32>} : memref<1x8x128xf32, #tpu.memory_space<vmem>>, vector<1x8x128xf32>,
    } else {
    }
    %c0 = arith.constant 0 : index
    %c0_1 = arith.constant 0 : index
    %3 = vector.load %arg2[%c0, %c0_1] : memref<8x128xf32, #tpu.memory_space<vmem>>, vector<8x128xf32>
    %c0_2 = arith.constant 0 : index
    %c0_3 = arith.constant 0 : index
    %4 = vector.load %arg3[%c0_2, %c0_3] : memref<8x128xf32, #tpu.memory_space<vmem>>, vector<8x128xf32>
    %5 = arith.subf %3, %4 : vector<8x128xf32>
    %6 = arith.mulf %5, %5 : vector<8x128xf32>
    %c1_i32 = arith.constant 1 : i32
    %7 = arith.muli %arg0, %c1_i32 : i32
    %8 = arith.addi %7, %arg1 : i32
    %c8_i32 = arith.constant 8 : i32
    %9 = arith.muli %8, %c8_i32 : i32
    %c8_i32_4 = arith.constant 8 : i32
    %10 = arith.addi %9, %c8_i32_4 : i32
    %c2_i32 = arith.constant 2 : i32
    %11 = arith.cmpi sle, %10, %c2_i32 : i32
    %12 = arith.extui %11 : i1 to i32
    %c0_i32_5 = arith.constant 0 : i32
    %13 = arith.cmpi ne, %12, %c0_i32_5 : i32
    scf.if %13 {
      %c0_7 = arith.constant 0 : index
      %c0_8 = arith.constant 0 : index
      %c0_9 = arith.constant 0 : index
      %17 = vector.load %arg4[%c0_7, %c0_8, %c0_9] : memref<1x8x128xf32, #tpu.memory_space<vmem>>, vector<1x8x128xf32>
      %18 = vector.shape_cast %17 : vector<1x8x128xf32> to vector<8x128xf32>
      %19 = vector.shape_cast %6 : vector<8x128xf32> to vector<1x8x128xf32>
      %cst = arith.constant dense<0.000000e+00> : vector<8x128xf32>
      %20 = vector.multi_reduction <add>, %19, %cst [0] : vector<1x8x128xf32> to vector<8x128xf32>
      %21 = arith.addf %18, %20 : vector<8x128xf32>
      %c0_10 = arith.constant 0 : index
      %c0_11 = arith.constant 0 : index
      %c0_12 = arith.constant 0 : index
      %22 = vector.load %arg4[%c0_10, %c0_11, %c0_12] : memref<1x8x128xf32, #tpu.memory_space<vmem>>, vector<1x8x128xf32>
      %23 = vector.shape_cast %22 : vector<1x8x128xf32> to vector<8x128xf32>
      %24 = vector.shape_cast %21 : vector<8x128xf32> to vector<1x8x128xf32>
      tpu.vector_store %arg4[%c0_10, %c0_11, %c0_12], %24 {strides = array<i32>} : memref<1x8x128xf32, #tpu.memory_space<vmem>>, vector<1x8x128xf32>,
    } else {
    }
    %true = arith.constant true
    %14 = arith.xori %11, %true : i1
    %15 = arith.extui %14 : i1 to i32
    %c0_i32_6 = arith.constant 0 : i32
    %16 = arith.cmpi ne, %15, %c0_i32_6 : i32
    scf.if %16 {
      %17 = tpu.iota {dimensions = array<i32: 0>} : vector<8x128xi32>
      %18 = vector.broadcast %9 : i32 to vector<8x128xi32>
      %19 = arith.addi %18, %17 : vector<8x128xi32>
      %c0_7 = arith.constant 0 : index
      %c0_8 = arith.constant 0 : index
      %c0_9 = arith.constant 0 : index
      %20 = vector.load %arg4[%c0_7, %c0_8, %c0_9] : memref<1x8x128xf32, #tpu.memory_space<vmem>>, vector<1x8x128xf32>
      %21 = vector.shape_cast %20 : vector<1x8x128xf32> to vector<8x128xf32>
      %c2_i32_10 = arith.constant 2 : i32
      %22 = vector.broadcast %c2_i32_10 : i32 to vector<8x128xi32>
      %23 = arith.cmpi slt, %19, %22 : vector<8x128xi32>
      %cst = arith.constant 0.000000e+00 : f32
      %24 = vector.broadcast %cst : f32 to vector<8x128xf32>
      %25 = arith.select %23, %6, %24 : vector<8x128xi1>, vector<8x128xf32>
      %26 = vector.shape_cast %25 : vector<8x128xf32> to vector<1x8x128xf32>
      %cst_11 = arith.constant dense<0.000000e+00> : vector<8x128xf32>
      %27 = vector.multi_reduction <add>, %26, %cst_11 [0] : vector<1x8x128xf32> to vector<8x128xf32>
      %28 = arith.addf %21, %27 : vector<8x128xf32>
      %c0_12 = arith.constant 0 : index
      %c0_13 = arith.constant 0 : index
      %c0_14 = arith.constant 0 : index
      %29 = vector.load %arg4[%c0_12, %c0_13, %c0_14] : memref<1x8x128xf32, #tpu.memory_space<vmem>>, vector<1x8x128xf32>
      %30 = vector.shape_cast %29 : vector<1x8x128xf32> to vector<8x128xf32>
      %31 = vector.shape_cast %28 : vector<8x128xf32> to vector<1x8x128xf32>
      tpu.vector_store %arg4[%c0_12, %c0_13, %c0_14], %31 {strides = array<i32>} : memref<1x8x128xf32, #tpu.memory_space<vmem>>, vector<1x8x128xf32>,
    } else {
    }
    return
  }
  func.func @transform_0(%arg0: i32, %arg1: i32) -> (i32, i32) {
    %c1_i32 = arith.constant 1 : i32
    %0 = arith.muli %arg0, %c1_i32 : i32
    %1 = arith.addi %0, %arg1 : i32
    %c0_i32 = arith.constant 0 : i32
    %2 = arith.minsi %1, %c0_i32 : i32
    %c0_i32_0 = arith.constant 0 : i32
    %c0_i32_1 = arith.constant 0 : i32
    return %2, %c0_i32_0 : i32, i32
  }
  func.func @transform_1(%arg0: i32, %arg1: i32) -> (i32, i32) {
    %c1_i32 = arith.constant 1 : i32
    %0 = arith.muli %arg0, %c1_i32 : i32
    %1 = arith.addi %0, %arg1 : i32
    %c0_i32 = arith.constant 0 : i32
    %2 = arith.minsi %1, %c0_i32 : i32
    %c0_i32_0 = arith.constant 0 : i32
    %c0_i32_1 = arith.constant 0 : i32
    return %2, %c0_i32_0 : i32, i32
  }
  func.func @transform_2(%arg0: i32, %arg1: i32) -> (i32, i32, i32) {
    %c0_i32 = arith.constant 0 : i32
    %c0_i32_0 = arith.constant 0 : i32
    %c0_i32_1 = arith.constant 0 : i32
    return %arg0, %c0_i32, %c0_i32_0 : i32, i32, i32
  }
}

</mosaic_0001>

<bundles_post_ra>
// kernel: tpu_custom_call.1
= control target key start
LH: loop header
LB: loop body
LE: loop exit
PB: predicated region body
PF: predicated region fallthrough
CT: control target
= control target key end

     0   :  { %7 = vsyncpa [#allocation3], 0  ;;  %s893_s0 = inlined_call_operand.hbm [shape: f32[2,128], index: 0, kind: input, shape index: {}]   ;;  %s894_s1 = inlined_call_operand.hbm [shape: f32[2,128], index: 1, kind: input, shape index: {}]   ;;  %s895_s2 = inlined_call_operand.hbm [shape: f32[2,8,128], index: 2, kind: output, shape index: {}]  }
   0x1   :  { %9 = vsyncpa [#allocation3 + $0x1], 0 }
   0x2   :  { %10 = vsyncpa [#allocation6], 0 }
   0x3   :  { %12 = vsyncpa [#allocation6 + $0x1], 0 }
   0x4   :  { %13 = vsyncpa [#allocation4], 0 }
   0x5   :  { %15 = vsyncpa [#allocation4 + $0x1], 0  ;;  %s739_s9 = smov 0   ;;  %s741_s10 = smov 0  }
   0x6   :  { %s743_s11 = smov 0   ;;  %s745_s12 = smov 0  }
   0x7   :  { %s747_s13 = smov 0   ;;  %s749_s14 = smov 0  }
   0x8   :  { %s751_s15 = smov 0   ;;  %s753_s16 = smov 0  }
   0x9 LB: > { %s409_s17 = sadd.s32 4294967295, %s715_s16   ;;  %s410_s18 = sadd.s32 4294967294, %s715_s16   ;;  %s715_s16 = sphi %s753_s16, %s21_s16   ;;  %s711_s15 = sphi %s751_s15, %s905_s15   ;;  %s707_s14 = sphi %s749_s14, %s904_s14   ;;  %s703_s13 = sphi %s747_s13, %s883_s13   ;;  %s699_s12 = sphi %s745_s12, %s903_s12   ;;  %s695_s11 = sphi %s743_s11, %s902_s11   ;;  %s691_s10 = sphi %s741_s10, %s901_s10   ;;  %s687_s9 = sphi %s739_s9, %s900_s9  }
   0xa   : > { %s33_s19 = sadd.s32 1, %s711_s15  ;;  %p684_p1 = scmp.ne.s32.totalorder %s703_s13, 0 }
   0xb   : > { %p35_p0 = scmp.ge.s32.totalorder %s33_s19, 2  ;;  %p54_p2 = scmp.eq.s32.totalorder %s715_s16, 0 }
   0xc   : > { %p59_p3 = scmp.ne.s32.totalorder %s703_s13, %s699_s12  ;;  %p60_p5 = scmp.eq.s32.totalorder %s409_s17, 0 }
   0xd   : > { %s907_s19 = smov (%p35_p0, %s33_s19), 0  ;;  %p785_p4 = por %p684_p1, %p54_p2 }
   0xe   : > { %p789_p6 = por %p60_p5, %p59_p3  ;;  %s101_s22 = ssub.s32 %s711_s15, %s907_s19 }
   0xf   : > { %p102_p7 = scmp.eq.s32.totalorder %s101_s22, 0  ;;  %s104_s23 = sadd.s32 1, %s695_s11 }
  0x10   : > { %p114_p8 = scmp.ne.s32.totalorder %s695_s11, %s691_s10  ;;  %p115_p9 = scmp.eq.s32.totalorder %s409_s17, 1 }
  0x11   : > { %s797_s24 = scalar_select %p102_p7, %s695_s11, %s104_s23  }
  0x12   : > { %p120_p10 = scmp.ne.s32.totalorder %s691_s10, %s687_s9  ;;  %p121_p11 = scmp.eq.s32.totalorder %s410_s18, 1 }
  0x13   : > { %p803_p12 = por %p115_p9, %p114_p8  ;;  %p412_p0 = scmp.ge.s32.totalorder %s715_s16, 2 }
  0x14   : > { %p807_p13 = por %p121_p11, %p120_p10 }
  0x15   : > { %137 = sbr.rel (%p412_p0) target bundleno = 70 (0x46), region = 16 }
  0x1a   : > { %140 = sbr.rel (!%p785_p4) target bundleno = 48 (0x30), region = 20 }
  0x1f   : > { %154 = vsyncadd [#allocation3], 96  ;;  %s717_s27 = smov [#allocation2]   ;;  %s159_s3 = sshll.u32 %s893_s0, 4  ;;  %s160_s3 = int_to_ptr.hbm [resolvable:$true] %s159_s3 }
  0x20   : > { %s161_s28 = sshll.u32 %s717_s27, 4  ;;  %s526_s4 = sshra.s32 %s160_s3, 4  ;;  %s162_s28 = int_to_ptr.vmem [resolvable:$true] %s161_s28  ;;  %s527_s4 = int_to_ptr.hbm [resolvable:$true] %s526_s4 }
  0x21   : > { %s533_s5 = scalar_lea.hbm %s527_s4, 2  ;;  %s537_s8 = scalar_lea.hbm %s893_s0, 2 }
  0x22   : > { %p534_p1 = scmp.ne.s32.totalorder %s527_s4, %s533_s5  ;;  %p539_p2 = scmp.lt.s32.totalorder %s537_s8, %s533_s5 }
  0x24   : > { %p541_p3 = pnand %p539_p2, %p534_p1 }
  0x26   : > { %544 = shalt.err (!%p541_p3)
}
  0x27   : > { %s545_s12 = sshra.s32 %s162_s28, 4  ;;  %s556_s18 = scalar_lea.vmem %s717_s27, 16  ;;  %s546_s12 = int_to_ptr.vmem [resolvable:$true] %s545_s12 }
  0x28   : > { %s552_s17 = scalar_lea.vmem %s546_s12, 2 }
  0x29   : > { %p553_p5 = scmp.ne.s32.totalorder %s546_s12, %s552_s17  ;;  %p558_p7 = scmp.lt.s32.totalorder %s556_s18, %s552_s17 }
  0x2b   : > { %p560_p8 = pnand %p558_p7, %p553_p5 }
  0x2d   : > { %563 = shalt.err (!%p560_p8)
}
  0x2e   : > { %s718_s22 = smov 32   ;;  %s719_s23 = smov 2  }
  0x2f   : > { %167 = dma.hbm_to_vmem [thread:$0]  %s160_s3, 32, %s162_s28, [#allocation3], %s718_s22, %s718_s22, %s719_s23  }
  0x30 PF: > { %170 = sbr.rel (!%p785_p4) target bundleno = 70 (0x46), region = 24 }
  0x35   : > { %184 = vsyncadd [#allocation6], 96  ;;  %s720_s29 = smov [#allocation5]   ;;  %s189_s6 = sshll.u32 %s894_s1, 4  ;;  %s190_s6 = int_to_ptr.hbm [resolvable:$true] %s189_s6 }
  0x36   : > { %s191_s30 = sshll.u32 %s720_s29, 4  ;;  %s565_s27 = sshra.s32 %s190_s6, 4  ;;  %s192_s30 = int_to_ptr.vmem [resolvable:$true] %s191_s30  ;;  %s566_s27 = int_to_ptr.hbm [resolvable:$true] %s565_s27 }
  0x37   : > { %s572_s7 = scalar_lea.hbm %s566_s27, 2  ;;  %s576_s28 = scalar_lea.hbm %s894_s1, 2 }
  0x38   : > { %p573_p9 = scmp.ne.s32.totalorder %s566_s27, %s572_s7  ;;  %p578_p10 = scmp.lt.s32.totalorder %s576_s28, %s572_s7 }
  0x3a   : > { %p580_p11 = pnand %p578_p10, %p573_p9 }
  0x3c   : > { %583 = shalt.err (!%p580_p11)
}
  0x3d   : > { %s584_s20 = sshra.s32 %s192_s30, 4  ;;  %s595_s17 = scalar_lea.vmem %s720_s29, 16  ;;  %s585_s20 = int_to_ptr.vmem [resolvable:$true] %s584_s20 }
  0x3e   : > { %s591_s3 = scalar_lea.vmem %s585_s20, 2 }
  0x3f   : > { %p592_p4 = scmp.ne.s32.totalorder %s585_s20, %s591_s3  ;;  %p597_p1 = scmp.lt.s32.totalorder %s595_s17, %s591_s3 }
  0x41   : > { %p599_p2 = pnand %p597_p1, %p592_p4 }
  0x43   : > { %602 = shalt.err (!%p599_p2)
}
  0x44   : > { %s721_s18 = smov 32   ;;  %s722_s22 = smov 2  }
  0x45   : > { %197 = dma.hbm_to_vmem [thread:$0]  %s190_s6, 32, %s192_s30, [#allocation6], %s721_s18, %s721_s18, %s722_s22  }
  0x46 PF: > { %p427_p3 = scmp.ge.s32.totalorder %s715_s16, 1  ;;  %p199_p5 = scmp.lt.s32.totalorder %s715_s16, 3 }
  0x48   : > { %p200_p7 = pnand %p427_p3, %p199_p5 }
  0x49   : > { %s205_s23 = sand.u32 (!%p200_p7), 1, %s703_s13  }
  0x4a   : > { %203 = sbr.rel (%p200_p7) target bundleno = 128 (0x80), region = 28  ;;  %s428_s4 = sshll.u32 (!%p200_p7), %s205_s23, 3 }
  0x4b   : > { %s206_s5 = scalar_lea.sflag (!%p200_p7), [#allocation3], %s205_s23  ;;  %s209_s29 = scalar_lea.vmem (!%p200_p7), [#allocation2], %s428_s4 }
  0x4f   : > { %669 = dma.done.wait (%p789_p6), %s206_s5, 128  }
  0x50   : > { %671 = vsyncadd (%p789_p6), %s206_s5, 4294967168  ;;  %s216_s30 = scalar_lea.sflag [#allocation6], %s205_s23  ;;  %s219_s6 = scalar_lea.vmem [#allocation5], %s428_s4 }
  0x51   : > { %673 = dma.done.wait (%p789_p6), %s216_s30, 128  }
  0x52   : > { %675 = vsyncadd (%p789_p6), %s216_s30, 4294967168  ;;  %s243_s27 = sand.u32 1, %s691_s10   ;;  %s843_s7 = sshll.u32 %s707_s14, 3  ;;  %v723_v0 = vmov 0.0   ;;  %v263_v1 = vld [vmem:[%s209_s29] sm:$0xff]  ;;  %v264_v2 = vld [vmem:[%s219_s6] sm:$0xff] }
  0x53   : > { %s430_s8 = sshll.u32 %s243_s27, 3  ;;  %s269_s12 = sadd.s32 8, %s843_s7  ;;  %v265_v3 = vsub.f32 %v263_v1, %v264_v2 }
  0x54   : > { %s245_s28 = scalar_lea.vmem [#allocation7], %s430_s8  ;;  %p432_p8 = scmp.gt.s32.totalorder %s269_s12, 2 }
  0x55   : > { %262 = vst [vmem:[%s245_s28] sm:$0xff] %v723_v0  ;;  %v266_v4 = vmul.f32 %v265_v3, %v265_v3 }
  0x56   : > { %273 = sbr.rel (%p432_p8) target bundleno = 96 (0x60), region = 44 }
  0x5c   : > { %v274_v5 = vld [vmem:[%s245_s28] sm:$0xff] }
  0x5d   : > { %v276_v6 = vadd.f32 %v274_v5, %v266_v4 }
  0x5f   : > { %277 = vst [vmem:[%s245_s28] sm:$0xff] %v276_v6 }
  0x60 PF: > { %p433_p6 = scmp.le.s32.totalorder %s269_s12, 2 }
  0x62   : > { %281 = sbr.rel (%p433_p6) target bundleno = 114 (0x72), region = 48 }
  0x67   : > { %v282_v7 = vlaneseq  ;;  %v284_v8 = vstv %s843_s7  ;;  %v286_v11 = vld [vmem:[%s245_s28] sm:$0xff] }
  0x69   : > { %v283_v9 = vshrl.u32 %v282_v7, 7 }
  0x6b   : > { %v285_v10 = vadd.s32 %v284_v8, %v283_v9 }
  0x6d   : > { %vm287_vm0 = vcmp.lt.s32.totalorder %v285_v10, 2 }
  0x6e   : > { %v288_v12 = vsel %vm287_vm0, %v266_v4, 0.0 }
  0x6f   : > { %v290_v13 = vadd.f32 %v288_v12, %v286_v11 }
  0x71   : > { %291 = vst [vmem:[%s245_s28] sm:$0xff] %v290_v13 }
  0x72 PF: > { %s303_s20 = scalar_lea.hbm %s895_s2, %s843_s7  ;;  %s305_s3 = sshll.u32 %s245_s28, 4  ;;  %s306_s3 = int_to_ptr.vmem [resolvable:$true] %s305_s3 }
  0x73   : > { %s307_s17 = sshll.u32 %s303_s20, 4  ;;  %s293_s18 = scalar_lea.sflag [#allocation4], %s243_s27  ;;  %s308_s17 = int_to_ptr.hbm [resolvable:$true] %s307_s17 }
  0x74   : > { %s618_s22 = sshra.s32 %s308_s17, 4  ;;  %s624_s29 = scalar_lea.hbm %s895_s2, 16  ;;  %s619_s22 = int_to_ptr.hbm [resolvable:$true] %s618_s22 }
  0x75   : > { %s620_s23 = scalar_lea.hbm %s619_s22, 8  ;;  %p625_p4 = scmp.lt.s32.totalorder %s619_s22, %s895_s2 }
  0x76   : > { %p621_p9 = scmp.ne.s32.totalorder %s619_s22, %s620_s23  ;;  %p626_p1 = scmp.lt.s32.totalorder %s624_s29, %s620_s23 }
  0x78   : > { %p622_p10 = pnand %p621_p9, %p803_p12  ;;  %p627_p2 = por %p626_p1, %p625_p4 }
  0x7a   : > { %p623_p11 = pneg %p622_p10 }
  0x7c   : > { %p628_p3 = pnand %p627_p2, %p623_p11 }
  0x7e   : > { %631 = shalt.err (!%p628_p3)
}
  0x7f   : > { %442 = dma.vmem_to_hbm [thread:$0]  (%p803_p12), %s306_s3, 128, %s308_s17, %s293_s18  }
  0x80 PF: > { %s319_s27 = sand.u32 1, %s687_s9   ;;  %p445_p5 = pnand %p412_p0, %p807_p13 }
  0x81   : > { %s320_s7 = scalar_lea.sflag [#allocation4], %s319_s27 }
  0x82   : > { %p446_p7 = pneg %p445_p5 }
  0x84   : > { %677 = dma.done.wait (%p446_p7), %s320_s7, 128  }
  0x85   : > { %679 = vsyncadd (%p446_p7), %s320_s7, 4294967168  ;;  %s21_s16 = sadd.s32 1, %s715_s16   ;;  %s900_s9 = smov %s691_s10 }
  0x86   : > { %p18_p8 = scmp.ge.s32.totalorder %s21_s16, 4   ;;  %s901_s10 = smov %s695_s11 }
  0x87   : > { %s902_s11 = smov %s797_s24  ;;  %s903_s12 = smov %s703_s13 }
  0x88   : > { %s883_s13 = smov 0   ;;  %s904_s14 = smov %s711_s15 }
  0x89   : > { %s905_s15 = smov %s907_s19  ;;  %20 = sbr.rel (!%p18_p8) target bundleno = 9 (0x9), region = 98 }
  0x8e   :  { %326 = vsyncpa [#allocation3], 1 }
  0x8f   :  { %328 = vsyncpa [#allocation3 + $0x1], 1 }
  0x90   :  { %329 = vsyncpa [#allocation6], 1 }
  0x91   :  { %331 = vsyncpa [#allocation6 + $0x1], 1 }
  0x92   :  { %332 = vsyncpa [#allocation4], 1 }
  0x93   :  { %334 = vsyncpa [#allocation4 + $0x1], 1 }

</bundles_post_ra>
